<compile_context>
chip_gen: v7x
topology: tpu7x:2x2x1
jax: 0.10.0
libtpu: 0.0.40
codegen_flags: <defaults>
</compile_context>

<pallas_src>
import jax
import jax.numpy as jnp
from jax import lax
from jax.experimental import pallas as pl
from jax.experimental.pallas import tpu as pltpu


def _round_up(x, m):
    return (x + m - 1) // m * m


def fused_gine_kernel(src_ref, dst_ref, x0_ref, ea_ref,
                      w1_ref, b1_ref, w2_ref, b2_ref,
                      out_ref, x_scr, xbf_scr, agg_scr):
    l = pl.program_id(0)               # layer index
    e = pl.program_id(1)               # edge-tile index
    n_layers = pl.num_programs(0)
    n_etiles = pl.num_programs(1)

    e_tile = ea_ref.shape[0]
    n_pad = x_scr.shape[0]

    # Load layer-0 node features into the resident VMEM scratch once.
    @pl.when(jnp.logical_and(l == 0, e == 0))
    def _():
        x_scr[...] = x0_ref[...]

    # At the start of every layer: zero the aggregation accumulator and cache
    # a bf16 copy of the node features (cast once per layer, reused per tile).
    @pl.when(e == 0)
    def _():
        agg_scr[...] = jnp.zeros_like(agg_scr)
        xbf_scr[...] = x_scr[...].astype(jnp.bfloat16)

    # Build one-hot gather [E_tile, N_pad] and scatter [N_pad, E_tile] on the
    # fly from the tiny index blocks.  Padded edges carry an out-of-range
    # sentinel -> all-zero rows/cols -> contribute nothing.  0/1 is exact bf16.
    src = src_ref[...]                                       # [E_tile, 1] i32
    dst = dst_ref[...]                                       # [1, E_tile] i32
    lane_ids = lax.broadcasted_iota(jnp.int32, (e_tile, n_pad), 1)
    sub_ids = lax.broadcasted_iota(jnp.int32, (n_pad, e_tile), 0)
    gather_m = (lane_ids == src).astype(jnp.bfloat16)        # [E_tile, N_pad]
    scatter_m = (sub_ids == dst).astype(jnp.bfloat16)        # [N_pad, E_tile]

    # x_j = x[src]  (gather as MXU matmul, bf16 operands, f32 accumulation)
    x_j = jnp.dot(gather_m, xbf_scr[...],
                  preferred_element_type=jnp.float32)        # [E_tile, H]
    # GINEConv.message: relu(x_j + edge_attr)   (elementwise in f32)
    msg = jnp.maximum(x_j + ea_ref[...].astype(jnp.float32), 0.0)
    # scatter-add over destination nodes, naturally oriented [N,E] @ [E,H]
    agg_scr[...] += jnp.dot(scatter_m, msg.astype(jnp.bfloat16),
                            preferred_element_type=jnp.float32)

    # Finalize this layer on its last edge tile: combine, MLP, post-act, skip.
    @pl.when(e == n_etiles - 1)
    def _():
        x_in = x_scr[...]
        comb = agg_scr[...] + x_in                           # (1 + eps)*x, eps=0
        h = jnp.dot(comb.astype(jnp.bfloat16), w1_ref[0],
                    preferred_element_type=jnp.float32) + b1_ref[0]
        h = jnp.maximum(h, 0.0)
        h = jnp.dot(h.astype(jnp.bfloat16), w2_ref[0],
                    preferred_element_type=jnp.float32) + b2_ref[0]

        @pl.when(l < n_layers - 1)
        def _():
            # GINEncoder post-activation (all but last conv) + short cut.
            x_scr[...] = jnp.maximum(h, 0.0) + x_in

        @pl.when(l == n_layers - 1)
        def _():
            out_ref[...] = h + x_in                          # short cut only


def gin_encoder_forward(params, z, edge_index, edge_attr, *, edge_tile=512):
    """GINEncoder.forward: short_cut=True, concat_hidden=False, relu."""
    node_emb = params["node_emb"]
    H = node_emb.shape[1]
    x = node_emb[z].astype(jnp.float32)        # embedding lookup (plain-JAX glue)
    N = x.shape[0]
    E = edge_attr.shape[0]
    L = len(params["convs"])

    # Padded / tiled layout: lane-dense hidden dim, 128-multiple edge tiles.
    H_pad = _round_up(H, 128)
    N_pad = _round_up(max(N, 8), 16)
    e_tile = min(_round_up(edge_tile, 128), _round_up(E, 128))
    E_pad = _round_up(E, e_tile)
    n_etiles = E_pad // e_tile

    # Zero-pad features; pad indices with out-of-range sentinel (= N_pad).
    x_p = jnp.zeros((N_pad, H_pad), jnp.float32).at[:N, :H].set(x)
    ea_p = jnp.zeros((E_pad, H_pad), jnp.bfloat16).at[:E, :H].set(
        edge_attr.astype(jnp.bfloat16))
    src = edge_index[0].astype(jnp.int32)
    dst = edge_index[1].astype(jnp.int32)
    src_col = jnp.full((E_pad,), N_pad, jnp.int32).at[:E].set(src).reshape(E_pad, 1)
    dst_row = jnp.full((E_pad,), N_pad, jnp.int32).at[:E].set(dst).reshape(1, E_pad)

    # Stack per-layer MLP params: bf16 weights (zero-padded), f32 biases.
    w1 = jnp.zeros((L, H_pad, H_pad), jnp.bfloat16)
    w2 = jnp.zeros((L, H_pad, H_pad), jnp.bfloat16)
    b1 = jnp.zeros((L, 1, H_pad), jnp.float32)
    b2 = jnp.zeros((L, 1, H_pad), jnp.float32)
    for i, p in enumerate(params["convs"]):
        w1 = w1.at[i, :H, :H].set(p["w1"].astype(jnp.bfloat16))
        w2 = w2.at[i, :H, :H].set(p["w2"].astype(jnp.bfloat16))
        b1 = b1.at[i, :, :H].set(p["b1"].astype(jnp.float32))
        b2 = b2.at[i, :, :H].set(p["b2"].astype(jnp.float32))

    flops = L * (4 * E_pad * N_pad * H_pad + 4 * N_pad * H_pad * H_pad)
    bytes_accessed = (L * (E_pad * H_pad * 2 + 2 * E_pad * 4
                           + 2 * H_pad * H_pad * 2 + 2 * H_pad * 4)
                      + 2 * N_pad * H_pad * 4)

    out = pl.pallas_call(
        fused_gine_kernel,
        out_shape=jax.ShapeDtypeStruct((N_pad, H_pad), jnp.float32),
        grid_spec=pltpu.PrefetchScalarGridSpec(
            num_scalar_prefetch=0,
            grid=(L, n_etiles),
            in_specs=[
                pl.BlockSpec((e_tile, 1), lambda l, e: (e, 0)),           # src
                pl.BlockSpec((1, e_tile), lambda l, e: (0, e)),           # dst
                pl.BlockSpec((N_pad, H_pad), lambda l, e: (0, 0)),        # x0
                pl.BlockSpec((e_tile, H_pad), lambda l, e: (e, 0)),       # edge_attr
                pl.BlockSpec((1, H_pad, H_pad), lambda l, e: (l, 0, 0)),  # w1
                pl.BlockSpec((1, 1, H_pad), lambda l, e: (l, 0, 0)),      # b1
                pl.BlockSpec((1, H_pad, H_pad), lambda l, e: (l, 0, 0)),  # w2
                pl.BlockSpec((1, 1, H_pad), lambda l, e: (l, 0, 0)),      # b2
            ],
            out_specs=pl.BlockSpec((N_pad, H_pad), lambda l, e: (0, 0)),
            scratch_shapes=[
                pltpu.VMEM((N_pad, H_pad), jnp.float32),   # resident node feats
                pltpu.VMEM((N_pad, H_pad), jnp.bfloat16),  # bf16 cache of feats
                pltpu.VMEM((N_pad, H_pad), jnp.float32),   # aggregation accum
            ],
        ),
        compiler_params=pltpu.CompilerParams(
            dimension_semantics=("arbitrary", "arbitrary"),
            vmem_limit_bytes=32 * 1024 * 1024,
        ),
        cost_estimate=pl.CostEstimate(flops=flops, transcendentals=0,
                                      bytes_accessed=bytes_accessed),
    )(src_col, dst_row, x_p, ea_p, w1, b1, w2, b2)

    return out[:N, :H]


def init_params(key, hidden_dim, num_convs=3, vocab=100):
    """Deterministic parameter init matching the PyTorch module's shapes."""
    keys = jax.random.split(key, 1 + 4 * num_convs)
    params = {
        # nn.Embedding(100, hidden_dim): N(0, 1)
        "node_emb": jax.random.normal(keys[0], (vocab, hidden_dim), jnp.float32),
        "convs": [],
    }
    bound = 1.0 / jnp.sqrt(hidden_dim)
    for i in range(num_convs):
        k1, k2, k3, k4 = keys[1 + 4 * i: 1 + 4 * (i + 1)]
        params["convs"].append({
            # stored [in, out] so the kernel does x @ W + b (== PyTorch x @ W.T)
            "w1": jax.random.uniform(k1, (hidden_dim, hidden_dim), jnp.float32, -bound, bound),
            "b1": jax.random.uniform(k2, (1, hidden_dim), jnp.float32, -bound, bound),
            "w2": jax.random.uniform(k3, (hidden_dim, hidden_dim), jnp.float32, -bound, bound),
            "b2": jax.random.uniform(k4, (1, hidden_dim), jnp.float32, -bound, bound),
        })
    return params


def gin_encoder_reference(params, z, edge_index, edge_attr):
    """Pure-JAX f32 reference of GINEncoder.forward (for validation only)."""
    x = params["node_emb"][z].astype(jnp.float32)
    src = edge_index[0]
    dst = edge_index[1]
    L = len(params["convs"])
    h = x
    for i, p in enumerate(params["convs"]):
        x_j = h[src]
        msg = jax.nn.relu(x_j + edge_attr)
        agg = jnp.zeros_like(h).at[dst].add(msg)
        comb = agg + h                                   # eps = 0
        t = jax.nn.relu(comb @ p["w1"] + p["b1"]) @ p["w2"] + p["b2"]
        if i < L - 1:
            t = jax.nn.relu(t)
        h = t + h                                        # short cut
    return h


if __name__ == "__main__":
    hidden_dim = 32
    num_nodes = 8
    num_edges = 16

    key = jax.random.PRNGKey(0)
    k_params, k_z, k_e, k_attr = jax.random.split(key, 4)

    params = init_params(k_params, hidden_dim, num_convs=3)

    z = jax.random.randint(k_z, (num_nodes,), 0, 100, dtype=jnp.int32)
    edge_index = jax.random.randint(k_e, (2, num_edges), 0, num_nodes,
                                    dtype=jnp.int32)
    edge_attr = jax.random.normal(k_attr, (num_edges, hidden_dim), jnp.float32)

    out = gin_encoder_forward(params, z, edge_index, edge_attr)
    out = jax.block_until_ready(out)

    assert out.shape == (num_nodes, hidden_dim)
    assert bool(jnp.isfinite(out).all())

    # Validate against the f32 reference (kernel uses bf16 matmul operands,
    # so allow a small tolerance).
    ref = gin_encoder_reference(params, z, edge_index, edge_attr)
    max_err = float(jnp.max(jnp.abs(out - ref)))
    assert bool(jnp.allclose(out, ref, atol=0.25, rtol=0.05)), \
        f"max abs err {max_err}"

    print("KERNEL_OK")
</pallas_src>

<mosaic_0001>
module attributes {stable_mosaic.version = 11 : i64} {
  func.func @fused_gine_kernel(%arg0: i32, %arg1: i32, %arg2: memref<128x1xi32, #tpu.memory_space<vmem>>, %arg3: memref<1x128xi32, #tpu.memory_space<vmem>>, %arg4: memref<16x128xf32, #tpu.memory_space<vmem>>, %arg5: memref<128x128xbf16, #tpu.memory_space<vmem>>, %arg6: memref<1x128x128xbf16, #tpu.memory_space<vmem>>, %arg7: memref<1x1x128xf32, #tpu.memory_space<vmem>>, %arg8: memref<1x128x128xbf16, #tpu.memory_space<vmem>>, %arg9: memref<1x1x128xf32, #tpu.memory_space<vmem>>, %arg10: memref<16x128xf32, #tpu.memory_space<vmem>>, %arg11: memref<16x128xf32, #tpu.memory_space<vmem>>, %arg12: memref<16x128xbf16, #tpu.memory_space<vmem>>, %arg13: memref<16x128xf32, #tpu.memory_space<vmem>>) attributes {dimension_semantics = [#tpu.dimension_semantics<arbitrary>, #tpu.dimension_semantics<arbitrary>], iteration_bounds = array<i64: 3, 1>, scalar_prefetch = 0 : i64, scratch_operands = 3 : i64, tpu.core_type = #tpu.core_type<tc>, window_params = [{transform_indices = @transform_0, window_bounds = array<i64: 128, 1>}, {transform_indices = @transform_1, window_bounds = array<i64: 1, 128>}, {pipeline_mode = #tpu.pipeline_mode<synchronous>, transform_indices = @transform_2, window_bounds = array<i64: 16, 128>}, {transform_indices = @transform_3, window_bounds = array<i64: 128, 128>}, {transform_indices = @transform_4, window_bounds = array<i64: 1, 128, 128>}, {transform_indices = @transform_5, window_bounds = array<i64: 1, 1, 128>}, {transform_indices = @transform_6, window_bounds = array<i64: 1, 128, 128>}, {transform_indices = @transform_7, window_bounds = array<i64: 1, 1, 128>}, {pipeline_mode = #tpu.pipeline_mode<synchronous>, transform_indices = @transform_8, window_bounds = array<i64: 16, 128>}]} {
    %c0_i32 = arith.constant 0 : i32
    %0 = arith.cmpi eq, %arg0, %c0_i32 : i32
    %c0_i32_0 = arith.constant 0 : i32
    %1 = arith.cmpi eq, %arg1, %c0_i32_0 : i32
    %2 = arith.andi %0, %1 : i1
    %3 = arith.extui %2 : i1 to i32
    %c0_i32_1 = arith.constant 0 : i32
    %4 = arith.cmpi ne, %3, %c0_i32_1 : i32
    scf.if %4 {
      %c0_19 = arith.constant 0 : index
      %c0_20 = arith.constant 0 : index
      %37 = vector.load %arg4[%c0_19, %c0_20] : memref<16x128xf32, #tpu.memory_space<vmem>>, vector<16x128xf32>
      %c0_21 = arith.constant 0 : index
      %c0_22 = arith.constant 0 : index
      %38 = vector.load %arg11[%c0_21, %c0_22] : memref<16x128xf32, #tpu.memory_space<vmem>>, vector<16x128xf32>
      tpu.vector_store %arg11[%c0_21, %c0_22], %37 {strides = array<i32>} : memref<16x128xf32, #tpu.memory_space<vmem>>, vector<16x128xf32>,
    } else {
    }
    %c0_i32_2 = arith.constant 0 : i32
    %5 = arith.cmpi eq, %arg1, %c0_i32_2 : i32
    %6 = arith.extui %5 : i1 to i32
    %c0_i32_3 = arith.constant 0 : i32
    %7 = arith.cmpi ne, %6, %c0_i32_3 : i32
    scf.if %7 {
      %cst_19 = arith.constant 0.000000e+00 : f32
      %37 = vector.broadcast %cst_19 : f32 to vector<16x128xf32>
      %c0_20 = arith.constant 0 : index
      %c0_21 = arith.constant 0 : index
      %38 = vector.load %arg13[%c0_20, %c0_21] : memref<16x128xf32, #tpu.memory_space<vmem>>, vector<16x128xf32>
      tpu.vector_store %arg13[%c0_20, %c0_21], %37 {strides = array<i32>} : memref<16x128xf32, #tpu.memory_space<vmem>>, vector<16x128xf32>,
      %c0_22 = arith.constant 0 : index
      %c0_23 = arith.constant 0 : index
      %39 = vector.load %arg11[%c0_22, %c0_23] : memref<16x128xf32, #tpu.memory_space<vmem>>, vector<16x128xf32>
      %40 = arith.truncf %39 : vector<16x128xf32> to vector<16x128xbf16>
      %c0_24 = arith.constant 0 : index
      %c0_25 = arith.constant 0 : index
      %41 = vector.load %arg12[%c0_24, %c0_25] : memref<16x128xbf16, #tpu.memory_space<vmem>>, vector<16x128xbf16>
      tpu.vector_store %arg12[%c0_24, %c0_25], %40 {strides = array<i32>} : memref<16x128xbf16, #tpu.memory_space<vmem>>, vector<16x128xbf16>,
    } else {
    }
    %c0 = arith.constant 0 : index
    %c0_4 = arith.constant 0 : index
    %8 = vector.load %arg2[%c0, %c0_4] : memref<128x1xi32, #tpu.memory_space<vmem>>, vector<128x1xi32>
    %c0_5 = arith.constant 0 : index
    %c0_6 = arith.constant 0 : index
    %9 = vector.load %arg3[%c0_5, %c0_6] : memref<1x128xi32, #tpu.memory_space<vmem>>, vector<1x128xi32>
    %10 = tpu.iota {dimensions = array<i32: 1>} : vector<128x16xi32>
    %11 = tpu.iota {dimensions = array<i32: 0>} : vector<16x128xi32>
    %12 = vector.broadcast %8 : vector<128x1xi32> to vector<128x16xi32>
    %13 = arith.cmpi eq, %10, %12 : vector<128x16xi32>
    %14 = arith.extui %13 : vector<128x16xi1> to vector<128x16xi32>
    %15 = arith.sitofp %14 : vector<128x16xi32> to vector<128x16xf32>
    %16 = arith.truncf %15 : vector<128x16xf32> to vector<128x16xbf16>
    %17 = vector.broadcast %9 : vector<1x128xi32> to vector<16x128xi32>
    %18 = arith.cmpi eq, %11, %17 : vector<16x128xi32>
    %19 = arith.extui %18 : vector<16x128xi1> to vector<16x128xi32>
    %20 = arith.sitofp %19 : vector<16x128xi32> to vector<16x128xf32>
    %21 = arith.truncf %20 : vector<16x128xf32> to vector<16x128xbf16>
    %c0_7 = arith.constant 0 : index
    %c0_8 = arith.constant 0 : index
    %22 = vector.load %arg12[%c0_7, %c0_8] : memref<16x128xbf16, #tpu.memory_space<vmem>>, vector<16x128xbf16>
    %cst = arith.constant dense<0.000000e+00> : vector<128x128xf32>
    %23 = tpu.matmul %16, %22, %cst {dimension_numbers = #tpu.dot_dimension_numbers<[1], [0], [0], [1], [0, 0, 1, 1], [], []>} : vector<128x16xbf16>, vector<16x128xbf16>, vector<128x128xf32> -> vector<128x128xf32>
    %c0_9 = arith.constant 0 : index
    %c0_10 = arith.constant 0 : index
    %24 = vector.load %arg5[%c0_9, %c0_10] : memref<128x128xbf16, #tpu.memory_space<vmem>>, vector<128x128xbf16>
    %25 = arith.extf %24 : vector<128x128xbf16> to vector<128x128xf32>
    %26 = arith.addf %23, %25 : vector<128x128xf32>
    %cst_11 = arith.constant 0.000000e+00 : f32
    %27 = vector.broadcast %cst_11 : f32 to vector<128x128xf32>
    %28 = arith.maximumf %26, %27 : vector<128x128xf32>
    %c0_12 = arith.constant 0 : index
    %c0_13 = arith.constant 0 : index
    %29 = vector.load %arg13[%c0_12, %c0_13] : memref<16x128xf32, #tpu.memory_space<vmem>>, vector<16x128xf32>
    %30 = arith.truncf %28 : vector<128x128xf32> to vector<128x128xbf16>
    %cst_14 = arith.constant dense<0.000000e+00> : vector<16x128xf32>
    %31 = tpu.matmul %21, %30, %cst_14 {dimension_numbers = #tpu.dot_dimension_numbers<[1], [0], [0], [1], [0, 0, 1, 1], [], []>} : vector<16x128xbf16>, vector<128x128xbf16>, vector<16x128xf32> -> vector<16x128xf32>
    %32 = arith.addf %29, %31 : vector<16x128xf32>
    %c0_15 = arith.constant 0 : index
    %c0_16 = arith.constant 0 : index
    %33 = vector.load %arg13[%c0_15, %c0_16] : memref<16x128xf32, #tpu.memory_space<vmem>>, vector<16x128xf32>
    tpu.vector_store %arg13[%c0_15, %c0_16], %32 {strides = array<i32>} : memref<16x128xf32, #tpu.memory_space<vmem>>, vector<16x128xf32>,
    %c0_i32_17 = arith.constant 0 : i32
    %34 = arith.cmpi eq, %arg1, %c0_i32_17 : i32
    %35 = arith.extui %34 : i1 to i32
    %c0_i32_18 = arith.constant 0 : i32
    %36 = arith.cmpi ne, %35, %c0_i32_18 : i32
    scf.if %36 {
      %c0_19 = arith.constant 0 : index
      %c0_20 = arith.constant 0 : index
      %37 = vector.load %arg11[%c0_19, %c0_20] : memref<16x128xf32, #tpu.memory_space<vmem>>, vector<16x128xf32>
      %c0_21 = arith.constant 0 : index
      %c0_22 = arith.constant 0 : index
      %38 = vector.load %arg13[%c0_21, %c0_22] : memref<16x128xf32, #tpu.memory_space<vmem>>, vector<16x128xf32>
      %39 = arith.addf %38, %37 : vector<16x128xf32>
      %40 = arith.truncf %39 : vector<16x128xf32> to vector<16x128xbf16>
      %c0_23 = arith.constant 0 : index
      %c0_24 = arith.constant 0 : index
      %c0_25 = arith.constant 0 : index
      %41 = vector.load %arg6[%c0_23, %c0_24, %c0_25] : memref<1x128x128xbf16, #tpu.memory_space<vmem>>, vector<1x128x128xbf16>
      %42 = vector.shape_cast %41 : vector<1x128x128xbf16> to vector<128x128xbf16>
      %cst_26 = arith.constant dense<0.000000e+00> : vector<16x128xf32>
      %43 = tpu.matmul %40, %42, %cst_26 {dimension_numbers = #tpu.dot_dimension_numbers<[1], [0], [0], [1], [0, 0, 1, 1], [], []>} : vector<16x128xbf16>, vector<128x128xbf16>, vector<16x128xf32> -> vector<16x128xf32>
      %c0_27 = arith.constant 0 : index
      %c0_28 = arith.constant 0 : index
      %c0_29 = arith.constant 0 : index
      %44 = vector.load %arg7[%c0_27, %c0_28, %c0_29] : memref<1x1x128xf32, #tpu.memory_space<vmem>>, vector<1x1x128xf32>
      %45 = vector.shape_cast %44 : vector<1x1x128xf32> to vector<1x128xf32>
      %46 = vector.broadcast %45 : vector<1x128xf32> to vector<16x128xf32>
      %47 = arith.addf %43, %46 : vector<16x128xf32>
      %cst_30 = arith.constant 0.000000e+00 : f32
      %48 = vector.broadcast %cst_30 : f32 to vector<16x128xf32>
      %49 = arith.maximumf %47, %48 : vector<16x128xf32>
      %50 = arith.truncf %49 : vector<16x128xf32> to vector<16x128xbf16>
      %c0_31 = arith.constant 0 : index
      %c0_32 = arith.constant 0 : index
      %c0_33 = arith.constant 0 : index
      %51 = vector.load %arg8[%c0_31, %c0_32, %c0_33] : memref<1x128x128xbf16, #tpu.memory_space<vmem>>, vector<1x128x128xbf16>
      %52 = vector.shape_cast %51 : vector<1x128x128xbf16> to vector<128x128xbf16>
      %cst_34 = arith.constant dense<0.000000e+00> : vector<16x128xf32>
      %53 = tpu.matmul %50, %52, %cst_34 {dimension_numbers = #tpu.dot_dimension_numbers<[1], [0], [0], [1], [0, 0, 1, 1], [], []>} : vector<16x128xbf16>, vector<128x128xbf16>, vector<16x128xf32> -> vector<16x128xf32>
      %c0_35 = arith.constant 0 : index
      %c0_36 = arith.constant 0 : index
      %c0_37 = arith.constant 0 : index
      %54 = vector.load %arg9[%c0_35, %c0_36, %c0_37] : memref<1x1x128xf32, #tpu.memory_space<vmem>>, vector<1x1x128xf32>
      %55 = vector.shape_cast %54 : vector<1x1x128xf32> to vector<1x128xf32>
      %56 = vector.broadcast %55 : vector<1x128xf32> to vector<16x128xf32>
      %57 = arith.addf %53, %56 : vector<16x128xf32>
      %c2_i32 = arith.constant 2 : i32
      %58 = arith.cmpi slt, %arg0, %c2_i32 : i32
      %59 = arith.extui %58 : i1 to i32
      %c0_i32_38 = arith.constant 0 : i32
      %60 = arith.cmpi ne, %59, %c0_i32_38 : i32
      scf.if %60 {
        %cst_41 = arith.constant 0.000000e+00 : f32
        %64 = vector.broadcast %cst_41 : f32 to vector<16x128xf32>
        %65 = arith.maximumf %57, %64 : vector<16x128xf32>
        %66 = arith.addf %65, %37 : vector<16x128xf32>
        %c0_42 = arith.constant 0 : index
        %c0_43 = arith.constant 0 : index
        %67 = vector.load %arg11[%c0_42, %c0_43] : memref<16x128xf32, #tpu.memory_space<vmem>>, vector<16x128xf32>
        tpu.vector_store %arg11[%c0_42, %c0_43], %66 {strides = array<i32>} : memref<16x128xf32, #tpu.memory_space<vmem>>, vector<16x128xf32>,
      } else {
      }
      %c2_i32_39 = arith.constant 2 : i32
      %61 = arith.cmpi eq, %arg0, %c2_i32_39 : i32
      %62 = arith.extui %61 : i1 to i32
      %c0_i32_40 = arith.constant 0 : i32
      %63 = arith.cmpi ne, %62, %c0_i32_40 : i32
      scf.if %63 {
        %64 = arith.addf %57, %37 : vector<16x128xf32>
        %c0_41 = arith.constant 0 : index
        %c0_42 = arith.constant 0 : index
        %65 = vector.load %arg10[%c0_41, %c0_42] : memref<16x128xf32, #tpu.memory_space<vmem>>, vector<16x128xf32>
        tpu.vector_store %arg10[%c0_41, %c0_42], %64 {strides = array<i32>} : memref<16x128xf32, #tpu.memory_space<vmem>>, vector<16x128xf32>,
      } else {
      }
    } else {
    }
    return
  }
  func.func @transform_0(%arg0: i32, %arg1: i32) -> (i32, i32) {
    %c0_i32 = arith.constant 0 : i32
    %c0_i32_0 = arith.constant 0 : i32
    return %arg1, %c0_i32 : i32, i32
  }
  func.func @transform_1(%arg0: i32, %arg1: i32) -> (i32, i32) {
    %c0_i32 = arith.constant 0 : i32
    %c0_i32_0 = arith.constant 0 : i32
    return %c0_i32, %arg1 : i32, i32
  }
  func.func @transform_2(%arg0: i32, %arg1: i32) -> (i32, i32) {
    %c0_i32 = arith.constant 0 : i32
    %c0_i32_0 = arith.constant 0 : i32
    %c0_i32_1 = arith.constant 0 : i32
    return %c0_i32, %c0_i32_0 : i32, i32
  }
  func.func @transform_3(%arg0: i32, %arg1: i32) -> (i32, i32) {
    %c0_i32 = arith.constant 0 : i32
    %c0_i32_0 = arith.constant 0 : i32
    return %arg1, %c0_i32 : i32, i32
  }
  func.func @transform_4(%arg0: i32, %arg1: i32) -> (i32, i32, i32) {
    %c0_i32 = arith.constant 0 : i32
    %c0_i32_0 = arith.constant 0 : i32
    %c0_i32_1 = arith.constant 0 : i32
    return %arg0, %c0_i32, %c0_i32_0 : i32, i32, i32
  }
  func.func @transform_5(%arg0: i32, %arg1: i32) -> (i32, i32, i32) {
    %c0_i32 = arith.constant 0 : i32
    %c0_i32_0 = arith.constant 0 : i32
    %c0_i32_1 = arith.constant 0 : i32
    return %arg0, %c0_i32, %c0_i32_0 : i32, i32, i32
  }
  func.func @transform_6(%arg0: i32, %arg1: i32) -> (i32, i32, i32) {
    %c0_i32 = arith.constant 0 : i32
    %c0_i32_0 = arith.constant 0 : i32
    %c0_i32_1 = arith.constant 0 : i32
    return %arg0, %c0_i32, %c0_i32_0 : i32, i32, i32
  }
  func.func @transform_7(%arg0: i32, %arg1: i32) -> (i32, i32, i32) {
    %c0_i32 = arith.constant 0 : i32
    %c0_i32_0 = arith.constant 0 : i32
    %c0_i32_1 = arith.constant 0 : i32
    return %arg0, %c0_i32, %c0_i32_0 : i32, i32, i32
  }
  func.func @transform_8(%arg0: i32, %arg1: i32) -> (i32, i32) {
    %c0_i32 = arith.constant 0 : i32
    %c0_i32_0 = arith.constant 0 : i32
    %c0_i32_1 = arith.constant 0 : i32
    return %c0_i32, %c0_i32_0 : i32, i32
  }
}

</mosaic_0001>

<bundles_post_ra>
// kernel: tpu_custom_call.1
= control target key start
LH: loop header
LB: loop body
LE: loop exit
PB: predicated region body
PF: predicated region fallthrough
CT: control target
= control target key end

     0   :  { %s2180_s0 = inlined_call_operand.vmem [shape: s32[128,1], index: 0, kind: input, shape index: {}]   ;;  %s2181_s1 = inlined_call_operand.vmem [shape: s32[1,128], index: 1, kind: input, shape index: {}]   ;;  %s2182_s2 = inlined_call_operand.vmem [shape: f32[16,128], index: 2, kind: input, shape index: {}]   ;;  %s2183_s3 = inlined_call_operand.vmem [shape: bf16[128,128], index: 3, kind: input, shape index: {}]   ;;  %s2184_s4 = inlined_call_operand.hbm [shape: bf16[3,128,128], index: 4, kind: input, shape index: {}]   ;;  %s2185_s5 = inlined_call_operand.vmem [shape: f32[3,1,128], index: 5, kind: input, shape index: {}]   ;;  %s2186_s6 = inlined_call_operand.hbm [shape: bf16[3,128,128], index: 6, kind: input, shape index: {}]   ;;  %s2187_s7 = inlined_call_operand.vmem [shape: f32[3,1,128], index: 7, kind: input, shape index: {}]   ;;  %s2188_s8 = inlined_call_operand.hbm [shape: f32[16,128], index: 8, kind: output, shape index: {}]  }
   0x1   :  { %2192 = sst [smem:[#allocation14_spill]] %s2184_s4 }
   0x2   :  { %13 = vsyncpa [#allocation6], 0 }
   0x3   :  { %15 = vsyncpa [#allocation6 + $0x1], 0 }
   0x4   :  { %16 = vsyncpa [#allocation9], 0 }
   0x5   :  { %18 = vsyncpa [#allocation9 + $0x1], 0 }
   0x6   :  { %19 = vsyncpa [#allocation7], 0  ;;  %s1759_s27 = smov 0   ;;  %s1761_s28 = smov 0  }
   0x7   :  { %s1763_s29 = smov 0   ;;  %s1765_s30 = smov 0  }
   0x8   :  { %s1767_s9 = smov 0   ;;  %s1769_s10 = smov 0  }
   0x9 LB: > { %s2189_s11 = sadd.s32 4294967295, %s1701_s10   ;;  %s37_s12 = sadd.s32 1, %s1697_s9  ;;  %s1701_s10 = sphi %s1769_s10, %s25_s10   ;;  %s1697_s9 = sphi %s1767_s9, %s2206_s9   ;;  %s1693_s30 = sphi %s1765_s30, %s2205_s30   ;;  %s1689_s29 = sphi %s1763_s29, %s2204_s29   ;;  %s1685_s28 = sphi %s1761_s28, %s2203_s28   ;;  %s1681_s27 = sphi %s1759_s27, %s2202_s27  }
   0xa   : > { %p39_p0 = scmp.ge.s32.totalorder %s37_s12, 3  ;;  %s143_s13 = sadd.s32 1, %s1689_s29 }
   0xb   : > { %p150_p1 = scmp.ne.s32.totalorder %s1689_s29, %s1685_s28  ;;  %p151_p2 = scmp.eq.s32.totalorder %s1701_s10, 0 }
   0xc   : > { %s2208_s12 = smov (%p39_p0, %s37_s12), 0  ;;  %p156_p4 = scmp.ne.s32.totalorder %s1685_s28, %s1681_s27 }
   0xd   : > { %p1795_p3 = por %p151_p2, %p150_p1  ;;  %s140_s15 = ssub.s32 %s1697_s9, %s2208_s12 }
   0xe   : > { %p157_p5 = scmp.eq.s32.totalorder %s2189_s11, 0  ;;  %p141_p6 = scmp.eq.s32.totalorder %s140_s15, 0 }
   0xf   : > { %p1479_p8 = scmp.lt.s32.totalorder %s1701_s10, 3  ;;  %s1813_s18 = sand.u32 1, %s1689_s29  }
  0x10   : > { %p1804_p7 = por %p157_p5, %p156_p4  ;;  %s1308_s19 = sshll.u32 %s1697_s9, 10 }
  0x11   : > { %s1810_s17 = scalar_select %p141_p6, %s1689_s29, %s143_s13  }
  0x12   : > { %s2194_s16 = scalar_select %p1804_p7, 1, 0 }
  0x13   : > { %s1245_s20 = sshll.u32 %s1813_s18, 6  ;;  %s2195_s4 = sld [smem:[#allocation14_spill]] }
  0x14   : > { %s310_s24 = scalar_lea.vmem [#allocation5], %s1245_s20  ;;  %p1828_p9 = pnand %p1479_p8, %p1795_p3 }
  0x15   : > { %s317_s25 = sshll.u32 %s310_s24, 4  ;;  %s307_s27 = scalar_lea.sflag [#allocation6], %s1813_s18  ;;  %s1832_s25 = int_to_ptr.vmem [resolvable:$true] %s317_s25 }
  0x16   : > { %p1559_p11 = pneg %p1828_p9 }
  0x19   : > { %s1822_s23 = scalar_lea.hbm %s2195_s4, %s1308_s19  ;;  %s1562_s14 = scalar_lea.hbm %s2195_s4, 3072 }
  0x1a   : > { %s1557_s13 = scalar_lea.hbm %s1822_s23, 1024  ;;  %p1563_p0 = scmp.lt.u32.totalorder %s1822_s23, %s2195_s4 }
  0x1b   : > { %p1558_p10 = scmp.ne.s32.totalorder %s1822_s23, %s1557_s13  ;;  %p1564_p1 = scmp.lt.u32.totalorder %s1562_s14, %s1557_s13 }
  0x1c   : > { %p1566_p3 = scmp.lt.u32.totalorder %s1557_s13, %s1822_s23 }
  0x1d   : > { %p1560_p12 = pnand %p1559_p11, %p1558_p10  ;;  %p1565_p2 = por %p1564_p1, %p1563_p0 }
  0x1f   : > { %p1561_p13 = pneg %p1560_p12  ;;  %p1567_p4 = por %p1566_p3, %p1565_p2 }
  0x21   : > { %p1568_p5 = pnand %p1567_p4, %p1561_p13 }
  0x23   : > { %1571 = shalt.err (!%p1568_p5)
}
  0x24   : > { %s1572_s11 = scalar_lea.vmem %s1832_s25, 1024  ;;  %s1703_s15 = smov [#allocation5]  }
  0x25   : > { %p1573_p6 = scmp.ne.s32.totalorder %s1832_s25, %s1572_s11  ;;  %s1577_s21 = sshll.u32 %s1703_s15, 4  ;;  %s1578_s21 = int_to_ptr.vmem [resolvable:$false] %s1577_s21 }
  0x26   : > { %s1579_s22 = scalar_lea.vmem %s1578_s21, 2048  ;;  %p1580_p12 = scmp.lt.s32.totalorder %s1832_s25, %s1578_s21 }
  0x27   : > { %p1575_p8 = pnand %p1573_p6, %p1559_p11  ;;  %p1581_p0 = scmp.lt.s32.totalorder %s1579_s22, %s1572_s11 }
  0x29   : > { %p1576_p10 = pneg %p1575_p8  ;;  %p1582_p1 = por %p1581_p0, %p1580_p12 }
  0x2b   : > { %p1583_p2 = pnand %p1582_p1, %p1576_p10 }
  0x2d   : > { %1586 = shalt.err (!%p1583_p2)
}
  0x2e   : > { %s2190_s13 = smov 64   ;;  %s1705_s14 = smov 4  }
  0x2f   : > { %1475 = dma.hbm_to_vmem [thread:$0]  (!%p1828_p9), %s1822_s23, 1024, %s1832_s25, %s307_s27, %s2190_s13, %s2190_s13, %s1705_s14  }
  0x30   : > { %p1251_p13 = scmp.ge.s32.totalorder %s1701_s10, 1  ;;  %p358_p3 = scmp.lt.s32.totalorder %s1701_s10, 4 }
  0x31   : > { %s1876_s21 = scalar_lea.hbm %s2186_s6, %s1308_s19  ;;  %s337_s22 = scalar_lea.vmem [#allocation8], %s1245_s20 }
  0x32   : > { %p1867_p4 = pnand %p1251_p13, %p358_p3  ;;  %s344_s4 = sshll.u32 %s337_s22, 4  ;;  %s1880_s4 = int_to_ptr.vmem [resolvable:$true] %s344_s4 }
  0x33   : > { %s334_s23 = scalar_lea.sflag [#allocation9], %s1813_s18  ;;  %s1587_s25 = scalar_lea.hbm %s1876_s21, 1024 }
  0x34   : > { %p1588_p5 = scmp.ne.s32.totalorder %s1876_s21, %s1587_s25  ;;  %s1592_s19 = scalar_lea.hbm %s2186_s6, 3072 }
  0x35   : > { %p1593_p10 = scmp.lt.u32.totalorder %s1876_s21, %s2186_s6  ;;  %p1594_p12 = scmp.lt.u32.totalorder %s1592_s19, %s1587_s25 }
  0x36   : > { %p1590_p6 = pnand %p1588_p5, %p1559_p11  ;;  %p1596_p1 = scmp.lt.u32.totalorder %s1587_s25, %s1876_s21 }
  0x37   : > { %p1595_p0 = por %p1594_p12, %p1593_p10 }
  0x38   : > { %p1591_p8 = pneg %p1590_p6 }
  0x39   : > { %p1597_p2 = por %p1596_p1, %p1595_p0 }
  0x3b   : > { %p1598_p13 = pnand %p1597_p2, %p1591_p8 }
  0x3d   : > { %1601 = shalt.err (!%p1598_p13)
}
  0x3e   : > { %s1602_s20 = scalar_lea.vmem %s1880_s4, 1024  ;;  %s1706_s22 = smov [#allocation8]  }
  0x3f   : > { %p1603_p3 = scmp.ne.s32.totalorder %s1880_s4, %s1602_s20  ;;  %s1607_s27 = sshll.u32 %s1706_s22, 4  ;;  %s1608_s27 = int_to_ptr.vmem [resolvable:$false] %s1607_s27 }
  0x40   : > { %s1609_s13 = scalar_lea.vmem %s1608_s27, 2048  ;;  %p1610_p7 = scmp.lt.s32.totalorder %s1880_s4, %s1608_s27 }
  0x41   : > { %p1605_p5 = pnand %p1603_p3, %p1559_p11  ;;  %p1611_p10 = scmp.lt.s32.totalorder %s1609_s13, %s1602_s20 }
  0x43   : > { %p1606_p6 = pneg %p1605_p5  ;;  %p1612_p12 = por %p1611_p10, %p1610_p7 }
  0x45   : > { %p1613_p0 = pnand %p1612_p12, %p1606_p6 }
  0x47   : > { %1616 = shalt.err (!%p1613_p0)
}
  0x48   : > { %s2198_s25 = smov 64   ;;  %362 = sbr.rel (%p1867_p4) target bundleno = 1177 (0x499), region = 52 }
  0x49   : > { %1478 = dma.hbm_to_vmem [thread:$0]  (!%p1828_p9), %s1876_s21, 1024, %s1880_s4, %s334_s23, %s2198_s25, %s2198_s25, %s1705_s14  }
  0x4a   : > { %s364_s24 = sand.u32 (!%p1867_p4), 1, %s1685_s28   ;;  %p2199_p7 = scmp.ne.s32.totalorder (!%p1867_p4), %s2194_s16, 0 }
  0x4b   : > { %s1252_s19 = sshll.u32 (!%p1867_p4), %s364_s24, 6  ;;  %s365_s15 = scalar_lea.sflag (!%p1867_p4), [#allocation6], %s364_s24 }
  0x4c   : > { %s1914_s20 = scalar_lea.vmem (!%p1867_p4), [#allocation5], %s1252_s19 }
  0x4f   : > { %1668 = dma.done.wait (%p2199_p7), %s365_s15, 1024  }
  0x50   : > { %1670 = vsyncadd (%p2199_p7), %s365_s15, 4294966272  ;;  %s374_s18 = scalar_lea.sflag [#allocation9], %s364_s24  ;;  %s1920_s26 = scalar_lea.vmem [#allocation8], %s1252_s19 }
  0x51   : > { %1672 = dma.done.wait (%p2199_p7), %s374_s18, 1024  }
  0x52   : > { %1674 = vsyncadd (%p2199_p7), %s374_s18, 4294966272  ;;  %p444_p9 = scmp.lt.s32.totalorder %s1693_s30, 2  ;;  %p451_p11 = scmp.eq.s32.totalorder %s1693_s30, 0 }
  0x53   : > { %v457_v0 = vld [vmem:[%s2182_s2] sm:$0xff] (%p451_p11)  ;;  %v458_v1 = vld [vmem:[%s2182_s2 + $0x8] sm:$0xff] (%p451_p11) }
  0x54   : > { %s1929_s4 = scalar_select %p444_p9, %s1693_s30, 2 }
  0x55   : > { %456 = sbr.rel (!%p451_p11) target bundleno = 92 (0x5c), region = 64  ;;  %459 = vst [vmem:[#allocation2] sm:$0xff] (%p451_p11), %v457_v0  ;;  %460 = vst [vmem:[#allocation2 + $0x8] sm:$0xff] (%p451_p11), %v458_v1 }
  0x56   : > { %s446_s21 = scalar_lea.vmem %s2185_s5, %s1929_s4  ;;  %s449_s27 = scalar_lea.vmem %s2187_s7, %s1929_s4 }
  0x5c PF: > { %v472_v2 = vld [vmem:[%s2180_s0 + $0x10] sm:$0xff]  ;;  %v470_v3 = vld [vmem:[%s2180_s0] sm:$0xff]  ;;  %v1707_v4 = vmov 0   ;;  %v473_v5 = vld [vmem:[%s2180_s0 + $0x18] sm:$0xff]  ;;  %v1708_v7 = vmov 0.0   ;;  %v487_v23 = vlaneseq  ;;  %vm640_vm4 = vcmask 130048  }
  0x5d   : > { %1540 = vset.pattern.permute.xlu1 %v1707_v4  ;;  %1539 = vset.pattern.permute.xlu0 %v1707_v4  ;;  %v471_v6 = vld [vmem:[%s2180_s0 + $0x8] sm:$0xff]  ;;  %v474_v9 = vld [vmem:[%s2180_s0 + $0x20] sm:$0xff]  ;;  %v477_v13 = vld [vmem:[%s2180_s0 + $0x38] sm:$0xff]  ;;  %p1302_p4 = scmp.ge.s32.totalorder %s1693_s30, 2 }
  0x5e   : > { %499 = vperm.xlu1 %1540, %v472_v2   ;;  %493 = vperm.xlu0 %1539, %v470_v3   ;;  %v475_v8 = vld [vmem:[%s2180_s0 + $0x28] sm:$0xff]  ;;  %v1964_v10 = vld [vmem:[#allocation2] sm:$0xff]  ;;  %v476_v14 = vld [vmem:[%s2180_s0 + $0x30] sm:$0xff]  ;;  %v2002_v24 = vand.u32 127, %v487_v23 }
  0x5f   : > { %1404 = vmatprep.subr.bf16.mxu1 %v1708_v7  ;;  %v1966_v11 = vld [vmem:[#allocation2 + $0x8] sm:$0xff]  ;;  %v478_v16 = vld [vmem:[%s2180_s0 + $0x40] sm:$0xff]  ;;  %v481_v17 = vld [vmem:[%s2180_s0 + $0x58] sm:$0xff] }
  0x60   : > { %v468_v12 = vpack.c.bf16 %v1966_v11, %v1964_v10  ;;  %v479_v15 = vld [vmem:[%s2180_s0 + $0x48] sm:$0xff]  ;;  %v480_v18 = vld [vmem:[%s2180_s0 + $0x50] sm:$0xff]  ;;  %v482_v20 = vld [vmem:[%s2180_s0 + $0x60] sm:$0xff] }
  0x61   : > { %v483_v19 = vld [vmem:[%s2180_s0 + $0x68] sm:$0xff]  ;;  %v485_v21 = vld [vmem:[%s2180_s0 + $0x78] sm:$0xff]  ;;  %v484_v22 = vld [vmem:[%s2180_s0 + $0x70] sm:$0xff] }
  0x62   : > { %502 = vperm.xlu1 %1540, %v473_v5   ;;  %496 = vperm.xlu0 %1539, %v471_v6   ;;  %v1541_v1 = vld [vmem:[%s1914_s20] sm:$0xff]   ;;  %v1542_v2 = vld [vmem:[%s1914_s20 + $0x8] sm:$0xff]   ;;  %v1543_v3 = vld [vmem:[%s1914_s20 + $0x10] sm:$0xff]  }
  0x63   : > { %1386 = vmatprep.subr.bf16.mxu0 %v468_v12  ;;  %v1544_v4 = vld [vmem:[%s1914_s20 + $0x18] sm:$0xff]   ;;  %v1545_v5 = vld [vmem:[%s1914_s20 + $0x20] sm:$0xff]   ;;  %v1546_v6 = vld [vmem:[%s1914_s20 + $0x28] sm:$0xff]  }
  0x64   : > { %1387 = vmatpush3.bf16.msra.mxu0 %v468_v12  ;;  %v1312_v12 = vld [vmem:[%s2183_s3] sm:$0xff]  }
  0x65   : > { %1424 = vmatprep.subr.bf16.mxu0 %v1708_v7 }
  0x66   : > { %508 = vperm.xlu1 %1540, %v475_v8   ;;  %505 = vperm.xlu0 %1539, %v474_v9   ;;  %v1547_v8 = vld [vmem:[%s1914_s20 + $0x30] sm:$0xff]   ;;  %v1343_v9 = vld [vmem:[%s2183_s3 + $0x8] sm:$0xff]  }
  0x6a   : > { %514 = vperm.xlu1 %1540, %v477_v13   ;;  %511 = vperm.xlu0 %1539, %v476_v14   ;;  %v1317_v13 = vunpack.c.l.bf16 %v1343_v9  ;;  %v1313_v14 = vunpack.c.l.bf16 %v1312_v12 }
  0x6e   : > { %520 = vperm.xlu1 %1540, %v479_v15   ;;  %517 = vperm.xlu0 %1539, %v478_v16   ;;  %v1318_v15 = vunpack.c.h.bf16 %v1343_v9 }
  0x72   : > { %526 = vperm.xlu1 %1540, %v481_v17   ;;  %523 = vperm.xlu0 %1539, %v480_v18   ;;  %v1314_v17 = vunpack.c.h.bf16 %v1312_v12 }
  0x76   : > { %532 = vperm.xlu1 %1540, %v483_v19   ;;  %529 = vperm.xlu0 %1539, %v482_v20  }
  0x7a   : > { %538 = vperm.xlu1 %1540, %v485_v21   ;;  %535 = vperm.xlu0 %1539, %v484_v22   ;;  %v1345_v22 = vld [vmem:[%s2183_s3 + $0x18] sm:$0xff]  }
  0xdd   : > { %v500_v25 = vpop.permute.xlu1 %499  ;;  %v494_v26 = vpop.permute.xlu0 %493 }
  0xde   : > { %vm542_vm0 = vcmp.eq.s32.totalorder %v2002_v24, %v500_v25  ;;  %vm540_vm1 = vcmp.eq.s32.totalorder %v2002_v24, %v494_v26  ;;  %v1344_v26 = vld [vmem:[%s2183_s3 + $0x10] sm:$0xff]  }
  0xdf   : > { %v1257_v29 = vsel %vm542_vm0, 1.0, %v1708_v7  ;;  %v1255_v30 = vsel %vm540_vm1, 1.0, %v1708_v7  ;;  %vm1709_vm1 = vmmov 0  }
  0xe0   : > { %1420 = vmatprep.mubr.msk.bf16.mxu1 %vm1709_vm1, %v1708_v7 }
  0xe1   : > { %v503_v27 = vpop.permute.xlu1 %502  ;;  %v497_v28 = vpop.permute.xlu0 %496 }
  0xe2   : > { %vm543_vm2 = vcmp.eq.s32.totalorder %v2002_v24, %v503_v27  ;;  %vm541_vm3 = vcmp.eq.s32.totalorder %v2002_v24, %v497_v28 }
  0xe3   : > { %v1258_v31 = vsel %vm543_vm2, 1.0, %v1708_v7  ;;  %v1256_v32 = vsel %vm541_vm3, 1.0, %v1708_v7 }
  0xe4   : > { %v589_v33 = vpack.c.bf16 %v1258_v31, %v1257_v29  ;;  %v588_v34 = vpack.c.bf16 %v1256_v32, %v1255_v30  ;;  %v1325_v30 = vunpack.c.l.bf16 %v1345_v22 }
  0xe5   : > { %v509_v35 = vpop.permute.xlu1 %508  ;;  %v506_v36 = vpop.permute.xlu0 %505 }
  0xe6   : > { %vm545_vm5 = vcmp.eq.s32.totalorder %v2002_v24, %v509_v35  ;;  %vm544_vm6 = vcmp.eq.s32.totalorder %v2002_v24, %v506_v36  ;;  %1388 = vmatprep.mubr.msk.bf16.mxu0 %vm640_vm4, %v588_v34  ;;  %v1326_v35 = vunpack.c.h.bf16 %v1345_v22 }
  0xe7   : > { %v1260_v37 = vsel %vm545_vm5, 1.0, %v1708_v7  ;;  %v1259_v38 = vsel %vm544_vm6, 1.0, %v1708_v7  ;;  %1389 = vmatmul.mubr.msk.bf16.vlgmr.msra.gmra.mrb[0].mxu0 %vm640_vm4, %v589_v33  ;;  %v1321_v33 = vunpack.c.l.bf16 %v1344_v26 }
  0xe8   : > { %v590_v39 = vpack.c.bf16 %v1260_v37, %v1259_v38  ;;  %1425 = vmatpush3.bf16.msra.mxu0 %v1541_v1  ;;  %v1322_v38 = vunpack.c.h.bf16 %v1344_v26 }
  0xe9   : > { %v515_v40 = vpop.permute.xlu1 %514  ;;  %v512_v41 = vpop.permute.xlu0 %511  ;;  %1426 = vmatprep.subr.bf16.mxu0 %v1708_v7 }
  0xea   : > { %vm547_vm7 = vcmp.eq.s32.totalorder %v2002_v24, %v515_v40  ;;  %vm546_vm8 = vcmp.eq.s32.totalorder %v2002_v24, %v512_v41  ;;  %1392 = vmatprep.mubr.msk.bf16.mxu0 %vm640_vm4, %v590_v39 }
  0xeb   : > { %v1262_v42 = vsel %vm547_vm7, 1.0, %v1708_v7  ;;  %v1261_v43 = vsel %vm546_vm8, 1.0, %v1708_v7 }
  0xec   : > { %v591_v44 = vpack.c.bf16 %v1262_v42, %v1261_v43  ;;  %1427 = vmatpush3.bf16.msra.mxu0 %v1542_v2  ;;  %v1347_v43 = vld [vmem:[%s2183_s3 + $0x28] sm:$0xff]   ;;  %v1348_v2 = vld [vmem:[%s2183_s3 + $0x30] sm:$0xff]  }
  0xed   : > { %v521_v45 = vpop.permute.xlu1 %520  ;;  %v518_v46 = vpop.permute.xlu0 %517  ;;  %1428 = vmatprep.subr.bf16.mxu0 %v1708_v7  ;;  %v1337_v12 = vunpack.c.l.bf16 %v1348_v2 }
  0xee   : > { %vm549_vm9 = vcmp.eq.s32.totalorder %v2002_v24, %v521_v45  ;;  %vm548_vm10 = vcmp.eq.s32.totalorder %v2002_v24, %v518_v46  ;;  %v1346_v46 = vld [vmem:[%s2183_s3 + $0x20] sm:$0xff]  }
  0xef   : > { %v1264_v47 = vsel %vm549_vm9, 1.0, %v1708_v7  ;;  %v1263_v48 = vsel %vm548_vm10, 1.0, %v1708_v7  ;;  %1393 = vmatmul.mubr.msk.bf16.gmra.mrb[4].mxu0 %vm640_vm4, %v591_v44 }
  0xf0   : > { %v592_v49 = vpack.c.bf16 %v1264_v47, %v1263_v48  ;;  %1429 = vmatpush3.bf16.msra.mxu0 %v1543_v3 }
  0xf1   : > { %v527_v50 = vpop.permute.xlu1 %526  ;;  %v524_v51 = vpop.permute.xlu0 %523  ;;  %1430 = vmatprep.subr.bf16.mxu0 %v1708_v7 }
  0xf2   : > { %vm551_vm11 = vcmp.eq.s32.totalorder %v2002_v24, %v527_v50  ;;  %vm550_vm12 = vcmp.eq.s32.totalorder %v2002_v24, %v524_v51  ;;  %1396 = vmatprep.mubr.msk.bf16.mxu0 %vm640_vm4, %v592_v49  ;;  %v1333_v50 = vunpack.c.l.bf16 %v1347_v43 }
  0xf3   : > { %v1266_v52 = vsel %vm551_vm11, 1.0, %v1708_v7  ;;  %v1265_v53 = vsel %vm550_vm12, 1.0, %v1708_v7 }
  0xf4   : > { %v593_v54 = vpack.c.bf16 %v1266_v52, %v1265_v53  ;;  %1431 = vmatpush3.bf16.msra.mxu0 %v1544_v4  ;;  %v1329_v53 = vunpack.c.l.bf16 %v1346_v46 }
  0xf5   : > { %v533_v55 = vpop.permute.xlu1 %532  ;;  %v530_v56 = vpop.permute.xlu0 %529  ;;  %1432 = vmatprep.subr.bf16.mxu0 %v1708_v7 }
  0xf6   : > { %vm553_vm13 = vcmp.eq.s32.totalorder %v2002_v24, %v533_v55  ;;  %vm552_vm14 = vcmp.eq.s32.totalorder %v2002_v24, %v530_v56  ;;  %v1334_v55 = vunpack.c.h.bf16 %v1347_v43 }
  0xf7   : > { %v1268_v57 = vsel %vm553_vm13, 1.0, %v1708_v7  ;;  %v1267_v58 = vsel %vm552_vm14, 1.0, %v1708_v7  ;;  %1397 = vmatmul.mubr.msk.bf16.gmra.mrb[8].mxu0 %vm640_vm4, %v593_v54 }
  0xf8   : > { %v594_v59 = vpack.c.bf16 %v1268_v57, %v1267_v58  ;;  %1433 = vmatpush3.bf16.msra.mxu0 %v1545_v5  ;;  %v1330_v58 = vunpack.c.h.bf16 %v1346_v46 }
  0xf9   : > { %v539_v60 = vpop.permute.xlu1 %538  ;;  %v536_v61 = vpop.permute.xlu0 %535  ;;  %1434 = vmatprep.subr.bf16.mxu0 %v1708_v7 }
  0xfa   : > { %vm555_vm15 = vcmp.eq.s32.totalorder %v2002_v24, %v539_v60  ;;  %vm554_vm0 = vcmp.eq.s32.totalorder %v2002_v24, %v536_v61  ;;  %1400 = vmatprep.mubr.msk.bf16.mxu0 %vm640_vm4, %v594_v59 }
  0xfb   : > { %v1270_v62 = vsel %vm555_vm15, 1.0, %v1708_v7  ;;  %v1269_v63 = vsel %vm554_vm0, 1.0, %v1708_v7 }
  0xfc   : > { %v595_v0 = vpack.c.bf16 %v1270_v62, %v1269_v63  ;;  %1435 = vmatpush3.bf16.msra.mxu0 %v1546_v6  ;;  %v1349_v63 = vld [vmem:[%s2183_s3 + $0x38] sm:$0xff]  }
  0xfd   : > { %1436 = vmatprep.subr.bf16.mxu0 %v1708_v7  ;;  %v1341_v6 = vunpack.c.l.bf16 %v1349_v63 }
  0xff   : > { %1401 = vmatmul.mubr.msk.bf16.gmra.mrb[12].mxu0 %vm640_vm4, %v595_v0 }
 0x100   : > { %1440 = vmatprep.mubr.msk.bf16.mxu0 %vm1709_vm1, %v1708_v7  ;;  %1437 = vmatpush3.bf16.msra.mxu0 %v1547_v8 }
 0x101   : > { %1438 = vmatprep.subr.bf16.mxu0 %v1708_v7 }
 0x1ba   : > { %v1390_v16 = vpop.f32.mrb[0].mxu0 }
 0x1bb   : > { %v708_v18 = vadd.f32 %v1390_v16, %v1317_v13  ;;  %v699_v19 = vpop.f32.mrb[1].mxu0 }
 0x1bc   : > { %v700_v20 = vadd.f32 %v1313_v14, %v699_v19  ;;  %v1391_v21 = vpop.f32.mrb[2].mxu0  ;;  %v1342_v14 = vunpack.c.h.bf16 %v1349_v63 }
 0x1bd   : > { %v711_v24 = vadd.f32 %v1391_v21, %v1318_v15  ;;  %v702_v25 = vpop.f32.mrb[3].mxu0  ;;  %v764_v28 = vmax.f32 %v708_v18, 0.0 }
 0x1be   : > { %v703_v27 = vadd.f32 %v1314_v17, %v702_v25  ;;  %v762_v31 = vmax.f32 %v700_v20, 0.0  ;;  %v1338_v17 = vunpack.c.h.bf16 %v1348_v2  ;;  %v490_v25 = vshrl.u32 %v487_v23, 7 }
 0x1bf   : > { %v765_v29 = vmax.f32 %v711_v24, 0.0  ;;  %v1710_v23 = vmov 1.0|1.0  }
 0x1c0   : > { %v763_v32 = vmax.f32 %v703_v27, 0.0 }
 0x1c1   : > { %v781_v34 = vpack.c.bf16 %v765_v29, %v764_v28 }
 0x1c2   : > { %v1394_v36 = vpop.f32.mrb[4].mxu0  ;;  %v780_v37 = vpack.c.bf16 %v763_v32, %v762_v31  ;;  %v491_v32 = vadd.s32 8, %v490_v25 }
 0x1c3   : > { %v724_v39 = vadd.f32 %v1394_v36, %v1325_v30  ;;  %v715_v40 = vpop.f32.mrb[5].mxu0  ;;  %v1549_v36 = vld [vmem:[%s1920_s26] sm:$0xff]  }
 0x1c4   : > { %v716_v41 = vadd.f32 %v1321_v33, %v715_v40  ;;  %v1395_v42 = vpop.f32.mrb[6].mxu0  ;;  %1405 = vmatpush3.bf16.msra.mxu1 %v780_v37  ;;  %v1550_v37 = vld [vmem:[%s1920_s26 + $0x8] sm:$0xff]   ;;  %v1553_v40 = vld [vmem:[%s1920_s26 + $0x20] sm:$0xff]  }
 0x1c5   : > { %v727_v44 = vadd.f32 %v1395_v42, %v1326_v35  ;;  %v718_v45 = vpop.f32.mrb[7].mxu0  ;;  %1406 = vmatprep.subr.bf16.mxu1 %v1708_v7  ;;  %v768_v48 = vmax.f32 %v724_v39, 0.0  ;;  %v1548_v35 = vld [vmem:[%s1914_s20 + $0x38] sm:$0xff]  }
 0x1c6   : > { %v719_v47 = vadd.f32 %v1322_v38, %v718_v45  ;;  %v766_v51 = vmax.f32 %v716_v41, 0.0  ;;  %1439 = vmatpush3.bf16.msra.mxu0 %v1548_v35  ;;  %v1551_v38 = vld [vmem:[%s1920_s26 + $0x10] sm:$0xff]   ;;  %v1552_v39 = vld [vmem:[%s1920_s26 + $0x18] sm:$0xff]   ;;  %v1554_v41 = vld [vmem:[%s1920_s26 + $0x28] sm:$0xff]  }
 0x1c7   : > { %v769_v49 = vmax.f32 %v727_v44, 0.0 }
 0x1c8   : > { %v767_v52 = vmax.f32 %v719_v47, 0.0  ;;  %1407 = vmatpush3.bf16.msra.mxu1 %v781_v34  ;;  %v1271_v34 = vld [vmem:[%s2181_s1] ss:$0 sm:$0xff] }
 0x1c9   : > { %v783_v54 = vpack.c.bf16 %v769_v49, %v768_v48  ;;  %1408 = vmatprep.subr.bf16.mxu1 %v1708_v7  ;;  %vm600_vm2 = vcmp.eq.s32.totalorder %v490_v25, %v1271_v34  ;;  %vm601_vm3 = vcmp.eq.s32.totalorder %v491_v32, %v1271_v34  ;;  %v1555_v49 = vld [vmem:[%s1920_s26 + $0x30] sm:$0xff]  }
 0x1ca   : > { %v782_v56 = vpack.c.bf16 %v767_v52, %v766_v51  ;;  %v1398_v57 = vpop.f32.mrb[8].mxu0  ;;  %vm1282_vm4 = vmpackc.low %vm601_vm3, %vm600_vm2  ;;  %v1284_v51 = vld [vmem:[%s446_s21] ss:$0 sm:$0xff] }
 0x1cb   : > { %v740_v59 = vadd.f32 %v1398_v57, %v1333_v50  ;;  %v731_v60 = vpop.f32.mrb[9].mxu0  ;;  %v1556_v50 = vld [vmem:[%s1920_s26 + $0x38] sm:$0xff]  }
 0x1cc   : > { %v732_v61 = vadd.f32 %v1329_v53, %v731_v60  ;;  %v1399_v62 = vpop.f32.mrb[10].mxu0  ;;  %1409 = vmatpush3.bf16.msra.mxu1 %v782_v56 }
 0x1cd   : > { %v743_v0 = vadd.f32 %v1399_v62, %v1334_v55  ;;  %v734_v1 = vpop.f32.mrb[11].mxu0  ;;  %1410 = vmatprep.subr.bf16.mxu1 %v1708_v7  ;;  %v772_v4 = vmax.f32 %v740_v59, 0.0 }
 0x1ce   : > { %v735_v3 = vadd.f32 %v1330_v58, %v734_v1  ;;  %v770_v8 = vmax.f32 %v732_v61, 0.0 }
 0x1cf   : > { %v773_v5 = vmax.f32 %v743_v0, 0.0 }
 0x1d0   : > { %v771_v9 = vmax.f32 %v735_v3, 0.0  ;;  %1411 = vmatpush3.bf16.msra.mxu1 %v783_v54 }
 0x1d1   : > { %v785_v13 = vpack.c.bf16 %v773_v5, %v772_v4  ;;  %1412 = vmatprep.subr.bf16.mxu1 %v1708_v7 }
 0x1d2   : > { %v784_v15 = vpack.c.bf16 %v771_v9, %v770_v8  ;;  %v1402_v16 = vpop.f32.mrb[12].mxu0 }
 0x1d3   : > { %v756_v18 = vadd.f32 %v1402_v16, %v1341_v6  ;;  %v747_v19 = vpop.f32.mrb[13].mxu0 }
 0x1d4   : > { %v748_v20 = vadd.f32 %v1337_v12, %v747_v19  ;;  %v1403_v21 = vpop.f32.mrb[14].mxu0  ;;  %1413 = vmatpush3.bf16.msra.mxu1 %v784_v15 }
 0x1d5   : > { %v759_v22 = vadd.f32 %v1403_v21, %v1342_v14  ;;  %v750_v24 = vpop.f32.mrb[15].mxu0  ;;  %1414 = vmatprep.subr.bf16.mxu1 %v1708_v7  ;;  %v776_v27 = vmax.f32 %v756_v18, 0.0 }
 0x1d6   : > { %v751_v26 = vadd.f32 %v1338_v17, %v750_v24  ;;  %v774_v29 = vmax.f32 %v748_v20, 0.0 }
 0x1d7   : > { %v777_v28 = vmax.f32 %v759_v22, 0.0 }
 0x1d8   : > { %v775_v30 = vmax.f32 %v751_v26, 0.0  ;;  %1415 = vmatpush3.bf16.msra.mxu1 %v785_v13 }
 0x1d9   : > { %v787_v31 = vpack.c.bf16 %v777_v28, %v776_v27  ;;  %1416 = vmatprep.subr.bf16.mxu1 %v1708_v7 }
 0x1da   : > { %v786_v33 = vpack.c.bf16 %v775_v30, %v774_v29 }
 0x1dc   : > { %1417 = vmatpush3.bf16.msra.mxu1 %v786_v33 }
 0x1dd   : > { %1418 = vmatprep.subr.bf16.mxu1 %v1708_v7 }
 0x1e0   : > { %1419 = vmatpush3.bf16.msra.mxu1 %v787_v31 }
 0x1e1   : > { %1444 = vmatprep.subr.bf16.mxu1 %v1708_v7 }
 0x1e3   : > { %1421 = vmatmul.mubr.msk.bf16.vlgmr.msra.gmra.mrb[0].mxu1 %vm1282_vm4, %v1710_v23 }
 0x1e4   : > { %1460 = vmatprep.mubr.msk.bf16.mxu1 %vm1709_vm1, %v1708_v7  ;;  %1445 = vmatpush3.bf16.msra.mxu1 %v1549_v36 }
 0x1e5   : > { %1446 = vmatprep.subr.bf16.mxu1 %v1708_v7 }
 0x1e8   : > { %1447 = vmatpush3.bf16.msra.mxu1 %v1550_v37 }
 0x1e9   : > { %1448 = vmatprep.subr.bf16.mxu1 %v1708_v7 }
 0x1ec   : > { %1449 = vmatpush3.bf16.msra.mxu1 %v1551_v38 }
 0x1ed   : > { %1450 = vmatprep.subr.bf16.mxu1 %v1708_v7 }
 0x1f0   : > { %1451 = vmatpush3.bf16.msra.mxu1 %v1552_v39 }
 0x1f1   : > { %1452 = vmatprep.subr.bf16.mxu1 %v1708_v7 }
 0x1f4   : > { %1453 = vmatpush3.bf16.msra.mxu1 %v1553_v40 }
 0x1f5   : > { %1454 = vmatprep.subr.bf16.mxu1 %v1708_v7 }
 0x1f8   : > { %1455 = vmatpush3.bf16.msra.mxu1 %v1554_v41 }
 0x1f9   : > { %1456 = vmatprep.subr.bf16.mxu1 %v1708_v7 }
 0x1fc   : > { %1457 = vmatpush3.bf16.msra.mxu1 %v1555_v49 }
 0x1fd   : > { %1458 = vmatprep.subr.bf16.mxu1 %v1708_v7  ;;  %v1293_v7 = vld [vmem:[%s449_s27] ss:$0 sm:$0xff] }
 0x200   : > { %1459 = vmatpush3.bf16.msra.mxu1 %v1556_v50 }
 0x2b6   : > { %v822_v42 = vpop.f32.mrb[0].mxu1 }
 0x2b7   : > { %v1422_v43 = vpop.f32.mrb[1].mxu1  ;;  %v840_v45 = vadd.f32 %v822_v42, %v1964_v10 }
 0x2b8   : > { %v825_v44 = vpop.f32.mrb[2].mxu1 }
 0x2b9   : > { %v841_v46 = vadd.f32 %v825_v44, %v1966_v11  ;;  %v1423_v47 = vpop.f32.mrb[3].mxu1 }
 0x2bb   : > { %v842_v48 = vpack.c.bf16 %v841_v46, %v840_v45 }
 0x2bd   : > { %1441 = vmatmul.mubr.bf16.vlgmr.msra.gmra.mrb[16].mxu0 %v842_v48 }
 0x390   : > { %v948_v52 = vpop.f32.mrb[16].mxu0 }
 0x391   : > { %v949_v53 = vadd.f32 %v1284_v51, %v948_v52  ;;  %v1442_v54 = vpop.f32.mrb[17].mxu0 }
 0x392   : > { %v951_v55 = vpop.f32.mrb[18].mxu0 }
 0x393   : > { %v952_v56 = vadd.f32 %v1284_v51, %v951_v55  ;;  %v1443_v57 = vpop.f32.mrb[19].mxu0  ;;  %v955_v58 = vmax.f32 %v949_v53, 0.0 }
 0x395   : > { %v956_v59 = vmax.f32 %v952_v56, 0.0 }
 0x397   : > { %v957_v60 = vpack.c.bf16 %v956_v59, %v955_v58 }
 0x399   : > { %1461 = vmatmul.mubr.bf16.vlgmr.msra.gmra.mrb[4].mxu1 %v957_v60 }
 0x469   : > { %1073 = sbr.rel (%p1302_p4) target bundleno = 1142 (0x476), region = 76 }
 0x46c   : > { %v1063_v61 = vpop.f32.mrb[4].mxu1 }
 0x46d   : > { %v1064_v62 = vadd.f32 %v1293_v7, %v1063_v61  ;;  %v1462_v63 = vpop.f32.mrb[5].mxu1 }
 0x46e   : > { %v1066_v0 = vpop.f32.mrb[6].mxu1 }
 0x46f   : > { %v1067_v1 = vadd.f32 %v1293_v7, %v1066_v0  ;;  %v1463_v2 = vpop.f32.mrb[7].mxu1  ;;  %v1074_v3 = vmax.f32 (!%p1302_p4), %v1064_v62, 0.0 }
 0x471   : > { %v1075_v4 = vmax.f32 %v1067_v1, 0.0  ;;  %v1076_v5 = vadd.f32 %v1074_v3, %v1964_v10 }
 0x473   : > { %v1077_v6 = vadd.f32 %v1075_v4, %v1966_v11  ;;  %1078 = vst [vmem:[#allocation2] sm:$0xff] %v1076_v5 }
 0x475   : > { %1079 = vst [vmem:[#allocation2 + $0x8] sm:$0xff] %v1077_v6 }
 0x476 PF: > { %p1303_p8 = scmp.ne.s32.totalorder %s1693_s30, 2 }
 0x477   : > { %v1084_v8 = vadd.f32 (!%p1303_p8), %v1064_v62, %v1964_v10  ;;  %v1085_v9 = vadd.f32 (!%p1303_p8), %v1067_v1, %v1966_v11 }
 0x478   : > { %1083 = sbr.rel (%p1303_p8) target bundleno = 1151 (0x47f), region = 80 }
 0x479   : > { %1086 = vst [vmem:[#allocation10] sm:$0xff] (!%p1303_p8), %v1084_v8  ;;  %1087 = vst [vmem:[#allocation10 + $0x8] sm:$0xff] (!%p1303_p8), %v1085_v9 }
 0x47f PF: > { %s2200_s26 = sadd.s32 4294967295, %s1701_s10   ;;  %s1711_s21 = smov [#allocation10]  }
 0x480   : > { %p2136_p1 = scmp.eq.s32.totalorder %s2200_s26, 2  ;;  %s1094_s27 = sshll.u32 %s1711_s21, 4  ;;  %s1095_s27 = int_to_ptr.vmem [resolvable:$true] %s1094_s27 }
 0x481   : > { %s1617_s25 = scalar_lea.vmem %s1095_s27, 256  ;;  %p1624_p5 = scmp.lt.s32.totalorder %s1095_s27, %s1095_s27 }
 0x482   : > { %p1618_p2 = scmp.ne.s32.totalorder %s1095_s27, %s1617_s25  ;;  %p1625_p6 = scmp.lt.s32.totalorder %s1617_s25, %s1617_s25 }
 0x484   : > { %p1619_p13 = pnand %p1618_p2, %p2136_p1  ;;  %p1626_p10 = por %p1625_p6, %p1624_p5 }
 0x486   : > { %p1620_p3 = pneg %p1619_p13 }
 0x488   : > { %p1627_p12 = pnand %p1626_p10, %p1620_p3 }
 0x48a   : > { %1630 = shalt.err (!%p1627_p12)
}
 0x48b   : > { %s1631_s19 = scalar_lea.hbm %s2188_s8, 256 }
 0x48c   : > { %p1632_p0 = scmp.ne.s32.totalorder %s2188_s8, %s1631_s19  ;;  %p1637_p11 = scmp.lt.u32.totalorder %s1631_s19, %s2188_s8 }
 0x48e   : > { %p1633_p7 = pnand %p1632_p0, %p2136_p1 }
 0x490   : > { %p1634_p9 = pneg %p1633_p7 }
 0x492   : > { %p1639_p4 = pnand %p1637_p11, %p1634_p9 }
 0x494   : > { %1642 = shalt.err (!%p1639_p4)
}
 0x495   : > { %s1712_s23 = smov 128   ;;  %s1713_s20 = smov 8  }
 0x496   : > { %1469 = dma.vmem_to_hbm [thread:$0]  (%p2136_p1), %s1095_s27, 256, %s2188_s8, [#allocation7], %s1712_s23, %s1712_s23, %s1713_s20  }
 0x497   : > { %1676 = dma.done.wait (%p2136_p1), [#allocation7], 256  }
 0x498   : > { %1678 = vsyncadd (%p2136_p1), [#allocation7], 4294967040 }
 0x499 PF: > { %s25_s10 = sadd.s32 1, %s1701_s10   ;;  %s2202_s27 = smov %s1685_s28 }
 0x49a   : > { %p22_p8 = scmp.ge.s32.totalorder %s25_s10, 5   ;;  %s2203_s28 = smov %s1689_s29 }
 0x49b   : > { %s2204_s29 = smov %s1810_s17  ;;  %s2205_s30 = smov %s1697_s9 }
 0x49c   : > { %s2206_s9 = smov %s2208_s12  ;;  %24 = sbr.rel (!%p22_p8) target bundleno = 9 (0x9), region = 137 }
 0x4a3   :  { %1110 = vsyncpa [#allocation6], 1 }
 0x4a4   :  { %1112 = vsyncpa [#allocation6 + $0x1], 1 }
 0x4a5   :  { %1113 = vsyncpa [#allocation9], 1 }
 0x4a6   :  { %1115 = vsyncpa [#allocation9 + $0x1], 1 }
 0x4a7   :  { %1116 = vsyncpa [#allocation7], 1 }
 0x4a8   :  { %1118 = vsyncpa [#allocation7 + $0x1], 1 }

</bundles_post_ra>
